<compile_context>
chip_gen: v5e
topology: v5e:2x2
jax: 0.10.0
libtpu: 0.0.40
codegen_flags: <defaults>
</compile_context>

<pallas_src>
import jax
import jax.numpy as jnp
from jax.experimental import pallas as pl
from jax.experimental.pallas import tpu as pltpu


def fixture_net_kernel(x_ref, w1_ref, b1_ref, w3t_ref, b3_ref, out_ref):
    # x_ref:  (TB, 8)
    # w1_ref: (8, 10)   b1_ref: (1, 10)
    # w3t_ref:(1, 10)   b3_ref: (1, 1)
    # out_ref:(1, TB)   lane-dense output slab
    x = x_ref[...]
    w3t = w3t_ref[...]
    b3 = b3_ref[...]

    # fc1: (TB, 8) @ (8, 10) + (1, 10) -> (TB, 10)   (MXU)
    h = jnp.dot(x, w1_ref[...], preferred_element_type=jnp.float32) + b1_ref[...]

    # fc3(h) as VPU mul + lane reduce (an N=1 matmul would waste the MXU and
    # expose result-FIFO latency twice on this serial dependence chain).
    d = jnp.sum(h * w3t, axis=-1, keepdims=True) + b3          # (TB, 1)

    # relu(h) / fc3(h)  -- exact divide to preserve 1e-5 accuracy.
    r = jnp.maximum(h, 0.0) / d                                 # (TB, 10)

    # fc3(r), written as a lane-dense (1, TB) row.
    y = jnp.sum(r * w3t, axis=-1)[None, :] + b3                 # (1, TB)
    out_ref[...] = y.astype(out_ref.dtype)


def fixture_net(x, w1t, b1, w3t, b3, *, tb=1024):
    """x: (B, 8); w1t: (8, 10); b1: (1, 10); w3t: (1, 10); b3: (1, 1) -> (B, 1)."""
    B, F = x.shape
    assert F == 8, "FixtureNet expects 8 input features"

    # Batch tile: multiple of 8 (sublane), capped at `tb`; pad B up to a multiple.
    b_pad8 = ((B + 7) // 8) * 8
    TB = min(tb, b_pad8)
    B_pad = ((B + TB - 1) // TB) * TB
    if B_pad != B:
        # Zero padding is benign: padded rows are dropped after the call.
        x = jnp.pad(x, ((0, B_pad - B), (0, 0)))
    num_tiles = B_pad // TB

    out = pl.pallas_call(
        fixture_net_kernel,
        out_shape=jax.ShapeDtypeStruct((1, B_pad), jnp.float32),
        grid_spec=pl.GridSpec(
            grid=(num_tiles,),
            in_specs=[
                pl.BlockSpec((TB, 8), lambda i: (i, 0)),      # x: tiled over batch
                pl.BlockSpec(w1t.shape, lambda i: (0, 0)),    # weights stay resident
                pl.BlockSpec(b1.shape, lambda i: (0, 0)),
                pl.BlockSpec(w3t.shape, lambda i: (0, 0)),
                pl.BlockSpec(b3.shape, lambda i: (0, 0)),
            ],
            out_specs=pl.BlockSpec((1, TB), lambda i: (0, i)),  # lane-dense output
        ),
        compiler_params=pltpu.CompilerParams(
            dimension_semantics=("parallel",),
        ),
    )(x, w1t, b1, w3t, b3)

    # (1, B_pad) slab -> (B, 1) column, dropping batch padding.
    return out[0, :B].reshape(B, 1)


def init_params(key):
    # Deterministic init; shapes match FixtureNet.__init__ (fc2 unused in forward).
    # fc1: Linear(8, 10) stored as (in, out); fc3: Linear(10, 1) stored as (1, 10).
    k1, k2, k3, k4 = jax.random.split(key, 4)
    w1t = jax.random.uniform(k1, (8, 10), jnp.float32, -0.3, 0.3)
    b1 = jax.random.uniform(k2, (1, 10), jnp.float32, -0.3, 0.3)
    w3t = jax.random.uniform(k3, (1, 10), jnp.float32, -0.3, 0.3)
    b3 = jax.random.uniform(k4, (1, 1), jnp.float32, -0.3, 0.3)
    return w1t, b1, w3t, b3


def reference(x, w1t, b1, w3t, b3):
    h = x @ w1t + b1
    d = h @ w3t.T + b3
    r = jnp.maximum(h, 0.0) / d
    return r @ w3t.T + b3


if __name__ == "__main__":
    key = jax.random.PRNGKey(0)
    kx, kx2, kp = jax.random.split(key, 3)
    w1t, b1, w3t, b3 = init_params(kp)

    # Small case (single tile, no padding).
    B = 8
    x = jax.random.normal(kx, (B, 8), jnp.float32)
    out = jax.block_until_ready(fixture_net(x, w1t, b1, w3t, b3))
    ref = reference(x, w1t, b1, w3t, b3)
    assert out.shape == (B, 1)
    assert jnp.allclose(out, ref, rtol=1e-5, atol=1e-5), (out, ref)

    # Larger case exercising the batch grid (multiple tiles + padding).
    B2 = 300
    x2 = jax.random.normal(kx2, (B2, 8), jnp.float32)
    out2 = jax.block_until_ready(fixture_net(x2, w1t, b1, w3t, b3, tb=128))
    ref2 = reference(x2, w1t, b1, w3t, b3)
    assert out2.shape == (B2, 1)
    assert jnp.allclose(out2, ref2, rtol=1e-5, atol=1e-5)

    print("KERNEL_OK")
</pallas_src>

<mosaic_0001>
module attributes {stable_mosaic.version = 11 : i64} {
  func.func @fixture_net_kernel(%arg0: i32, %arg1: memref<8x8xf32, #tpu.memory_space<vmem>>, %arg2: memref<8x10xf32, #tpu.memory_space<vmem>>, %arg3: memref<1x10xf32, #tpu.memory_space<vmem>>, %arg4: memref<1x10xf32, #tpu.memory_space<vmem>>, %arg5: memref<1x1xf32, #tpu.memory_space<vmem>>, %arg6: memref<1x8xf32, #tpu.memory_space<vmem>>) attributes {dimension_semantics = [#tpu.dimension_semantics<parallel>], iteration_bounds = array<i64: 1>, scalar_prefetch = 0 : i64, scratch_operands = 0 : i64, tpu.core_type = #tpu.core_type<tc>, window_params = [{transform_indices = @transform_0, window_bounds = array<i64: 8, 8>}, {pipeline_mode = #tpu.pipeline_mode<synchronous>, transform_indices = @transform_1, window_bounds = array<i64: 8, 10>}, {pipeline_mode = #tpu.pipeline_mode<synchronous>, transform_indices = @transform_2, window_bounds = array<i64: 1, 10>}, {pipeline_mode = #tpu.pipeline_mode<synchronous>, transform_indices = @transform_3, window_bounds = array<i64: 1, 10>}, {pipeline_mode = #tpu.pipeline_mode<synchronous>, transform_indices = @transform_4, window_bounds = array<i64: 1, 1>}, {transform_indices = @transform_5, window_bounds = array<i64: 1, 8>}]} {
    %c0 = arith.constant 0 : index
    %c0_0 = arith.constant 0 : index
    %0 = vector.load %arg1[%c0, %c0_0] : memref<8x8xf32, #tpu.memory_space<vmem>>, vector<8x8xf32>
    %c0_1 = arith.constant 0 : index
    %c0_2 = arith.constant 0 : index
    %1 = vector.load %arg4[%c0_1, %c0_2] : memref<1x10xf32, #tpu.memory_space<vmem>>, vector<1x10xf32>
    %c0_3 = arith.constant 0 : index
    %c0_4 = arith.constant 0 : index
    %2 = vector.load %arg5[%c0_3, %c0_4] : memref<1x1xf32, #tpu.memory_space<vmem>>, vector<1x1xf32>
    %c0_5 = arith.constant 0 : index
    %c0_6 = arith.constant 0 : index
    %3 = vector.load %arg2[%c0_5, %c0_6] : memref<8x10xf32, #tpu.memory_space<vmem>>, vector<8x10xf32>
    %cst = arith.constant dense<0.000000e+00> : vector<8x10xf32>
    %4 = tpu.matmul %0, %3, %cst {dimension_numbers = #tpu.dot_dimension_numbers<[1], [0], [0], [1], [0, 0, 1, 1], [], []>} : vector<8x8xf32>, vector<8x10xf32>, vector<8x10xf32> -> vector<8x10xf32>
    %c0_7 = arith.constant 0 : index
    %c0_8 = arith.constant 0 : index
    %5 = vector.load %arg3[%c0_7, %c0_8] : memref<1x10xf32, #tpu.memory_space<vmem>>, vector<1x10xf32>
    %6 = vector.broadcast %5 : vector<1x10xf32> to vector<8x10xf32>
    %7 = arith.addf %4, %6 : vector<8x10xf32>
    %8 = vector.broadcast %1 : vector<1x10xf32> to vector<8x10xf32>
    %9 = arith.mulf %7, %8 : vector<8x10xf32>
    %cst_9 = arith.constant dense<0.000000e+00> : vector<8xf32>
    %10 = vector.multi_reduction <add>, %9, %cst_9 [1] : vector<8x10xf32> to vector<8xf32>
    %11 = vector.shape_cast %10 : vector<8xf32> to vector<8x1xf32>
    %12 = vector.broadcast %2 : vector<1x1xf32> to vector<8x1xf32>
    %13 = arith.addf %11, %12 : vector<8x1xf32>
    %cst_10 = arith.constant 0.000000e+00 : f32
    %14 = vector.broadcast %cst_10 : f32 to vector<8x10xf32>
    %15 = arith.maximumf %7, %14 : vector<8x10xf32>
    %16 = vector.broadcast %13 : vector<8x1xf32> to vector<8x10xf32>
    %17 = arith.divf %15, %16 : vector<8x10xf32>
    %18 = vector.broadcast %1 : vector<1x10xf32> to vector<8x10xf32>
    %19 = arith.mulf %17, %18 : vector<8x10xf32>
    %cst_11 = arith.constant dense<0.000000e+00> : vector<8xf32>
    %20 = vector.multi_reduction <add>, %19, %cst_11 [1] : vector<8x10xf32> to vector<8xf32>
    %21 = vector.shape_cast %20 : vector<8xf32> to vector<1x8xf32>
    %22 = vector.broadcast %2 : vector<1x1xf32> to vector<1x8xf32>
    %23 = arith.addf %21, %22 : vector<1x8xf32>
    %c0_12 = arith.constant 0 : index
    %c0_13 = arith.constant 0 : index
    %24 = vector.load %arg6[%c0_12, %c0_13] : memref<1x8xf32, #tpu.memory_space<vmem>>, vector<1x8xf32>
    tpu.vector_store %arg6[%c0_12, %c0_13], %23 {strides = array<i32>} : memref<1x8xf32, #tpu.memory_space<vmem>>, vector<1x8xf32>,
    return
  }
  func.func @transform_0(%arg0: i32) -> (i32, i32) {
    %c0_i32 = arith.constant 0 : i32
    %c0_i32_0 = arith.constant 0 : i32
    return %arg0, %c0_i32 : i32, i32
  }
  func.func @transform_1(%arg0: i32) -> (i32, i32) {
    %c0_i32 = arith.constant 0 : i32
    %c0_i32_0 = arith.constant 0 : i32
    %c0_i32_1 = arith.constant 0 : i32
    return %c0_i32, %c0_i32_0 : i32, i32
  }
  func.func @transform_2(%arg0: i32) -> (i32, i32) {
    %c0_i32 = arith.constant 0 : i32
    %c0_i32_0 = arith.constant 0 : i32
    %c0_i32_1 = arith.constant 0 : i32
    return %c0_i32, %c0_i32_0 : i32, i32
  }
  func.func @transform_3(%arg0: i32) -> (i32, i32) {
    %c0_i32 = arith.constant 0 : i32
    %c0_i32_0 = arith.constant 0 : i32
    %c0_i32_1 = arith.constant 0 : i32
    return %c0_i32, %c0_i32_0 : i32, i32
  }
  func.func @transform_4(%arg0: i32) -> (i32, i32) {
    %c0_i32 = arith.constant 0 : i32
    %c0_i32_0 = arith.constant 0 : i32
    %c0_i32_1 = arith.constant 0 : i32
    return %c0_i32, %c0_i32_0 : i32, i32
  }
  func.func @transform_5(%arg0: i32) -> (i32, i32) {
    %c0_i32 = arith.constant 0 : i32
    %c0_i32_0 = arith.constant 0 : i32
    return %c0_i32, %arg0 : i32, i32
  }
}

</mosaic_0001>

<bundles_post_ra>
// kernel: tpu_custom_call.1
= control target key start
LH: loop header
LB: loop body
LE: loop exit
PB: predicated region body
PF: predicated region fallthrough
CT: control target
= control target key end

     0   :  { %s295_s0 = inlined_call_operand.hbm [shape: f32[8,8], index: 0, kind: input, shape index: {}]   ;;  %s296_s1 = inlined_call_operand.hbm [shape: f32[8,10], index: 1, kind: input, shape index: {}]   ;;  %s297_s2 = inlined_call_operand.vmem [shape: f32[1,10], index: 2, kind: input, shape index: {}]   ;;  %s298_s3 = inlined_call_operand.vmem [shape: f32[1,10], index: 3, kind: input, shape index: {}]   ;;  %s299_s4 = inlined_call_operand.<no memory space> [shape: f32[1,1], index: 4, kind: input, shape index: {}]   ;;  %s300_s5 = inlined_call_operand.hbm [shape: f32[1,8], index: 5, kind: output, shape index: {}]  }
   0x1   :  { %v10_v0 = vstv %s299_s4 }
   0x2   :  { %11 = vst [vmem:[#allocation2] sm:$0x1] %v10_v0 }
   0x3   :  { %12 = vsyncpa [#allocation4], 0 }
   0x4   :  { %13 = vsyncpa [#allocation7], 0 }
   0x5   :  { %14 = vsyncpa [#allocation5], 0  ;;  %s20_s22 = sshll.u32 %s295_s0, 4  ;;  %s241_s23 = smov [#allocation3]   ;;  %s21_s22 = int_to_ptr.hbm [resolvable:$true] %s20_s22 }
   0x6   :  { %s22_s24 = sshll.u32 %s241_s23, 4  ;;  %s31_s27 = sshll.u32 %s296_s1, 4  ;;  %s23_s24 = int_to_ptr.vmem [resolvable:$true] %s22_s24  ;;  %s32_s27 = int_to_ptr.hbm [resolvable:$true] %s31_s27 }
   0x7   :  { %25 = dma.hbm_to_vmem [thread:$0]  %s21_s22, 128, %s23_s24, [#allocation4]  }
   0x8   :  { %s242_s28 = smov [#allocation6]  }
   0x9   :  { %s33_s4 = sshll.u32 %s242_s28, 4  ;;  %s34_s4 = int_to_ptr.vmem [resolvable:$true] %s33_s4 }
   0xa   :  { %36 = dma.hbm_to_vmem [thread:$0]  %s32_s27, 128, %s34_s4, [#allocation7]  }
   0xb   :  { %235 = dma.done.wait [#allocation4], 128  }
   0xc   :  { %236 = vsyncadd [#allocation4], 4294967168 }
   0xd   :  { %237 = dma.done.wait [#allocation7], 128  }
   0xe   :  { %238 = vsyncadd [#allocation7], 4294967168  ;;  %vm59_vm0 = vcmask 64512   ;;  %v54_v1 = vld [vmem:[#allocation6] sm:$0xff]  ;;  %v51_v2 = vld [vmem:[#allocation3] sm:$0xff]  ;;  %vm87_vm1 = vcmask 80896   ;;  %v127_v30 = vlaneseq }
   0xf   :  { %78 = vmatpush.msra.mxu0 %v54_v1  ;;  %v158_v3 = vld [vmem:[%s297_s2] ss:$0 sm:$0xff]  ;;  %v243_v10 = vmov 0   ;;  %s244_s2 = smov [#allocation8]   ;;  %s140_s8 = sshll.u32 %s300_s5, 4  ;;  %vm131_vm6 = vcmask 57344   ;;  %s141_s8 = int_to_ptr.hbm [resolvable:$true] %s140_s8 }
  0x10   :  { %151 = vmatmul.msk.f32.vlgmr.msra.gmra.mxu0 %vm59_vm0, %v51_v2  ;;  %v159_v4 = vld [vmem:[%s298_s3] ss:$0 sm:$0xff]  ;;  %156 = vset.pattern.permute.xlu0 %v243_v10  ;;  %v128_v32 = vand.u32 127, %v127_v30  ;;  %s138_s3 = sshll.u32 %s244_s2, 4  ;;  %s139_s3 = int_to_ptr.vmem [resolvable:$true] %s138_s3 }
  0x11   :  { %v53_v9 = vld [vmem:[#allocation2] sm:$0x1]  ;;  %157 = vset.pattern.permute.xlu1 %v243_v10 }
  0x12   :  { %121 = vperm.xlu1 %157, %v53_v9   ;;  %v160_v11 = vld [vmem:[#allocation2] ss:$0 sm:$0xff] }
  0x84   :  { %v122_v29 = vpop.permute.xlu1 %121 }
  0x85   :  { %v124_v31 = vperm.slane %v122_v29, 0 }
  0x8d   :  { %v80_v5 = vpop.f32.mrf.mxu0 }
  0x8e   :  { %v81_v6 = vadd.f32 %v158_v3, %v80_v5 }
  0x90   :  { %v86_v7 = vmul.f32 %v159_v4, %v81_v6  ;;  %v95_v23 = vmax.f32 %v81_v6, 0.0 }
  0x92   :  { %v88_v8 = vsel %vm87_vm1, %v86_v7, 0.0 }
  0x93   :  { %89 = vadd.xlane.f32.xlu0 %v88_v8 }
 0x106   :  { %v90_v12 = vpop.xlane.xlu0 %89 }
 0x107   :  { %v94_v13 = vadd.f32 %v160_v11, %v90_v12 }
 0x109   :  { %98 = vperm.xlu0 %156, %v94_v13  }
 0x17b   :  { %v99_v14 = vpop.permute.xlu0 %98 }
 0x17c   :  { %161 = vrcp.f32 %v99_v14  ;;  %v112_v18 = vand.u32 2147483648, %v99_v14  ;;  %v110_v20 = vand.u32 2147483647, %v99_v14  ;;  %vm106_vm3 = vweird.f32 %v99_v14 }
 0x17e   :  { %v113_v22 = vor.u32 1.1754944e-38, %v112_v18  ;;  %vm111_vm5 = vcmp.eq.f32.partialorder %v110_v20, 8.507059e+37 }
 0x182   :  { %v162_v15 = vpop.eup %161 }
 0x183   :  { %v102_v16 = vmul.f32 %v162_v15, %v99_v14  ;;  %vm107_vm2 = vweird.f32 %v162_v15 }
 0x184   :  { %vm108_vm4 = vmor %vm106_vm3, %vm107_vm2 }
 0x185   :  { %v103_v17 = vsub.f32 1.0, %v102_v16 }
 0x187   :  { %v104_v19 = vmul.f32 %v162_v15, %v103_v17 }
 0x189   :  { %v105_v21 = vadd.f32 %v162_v15, %v104_v19 }
 0x18b   :  { %v109_v24 = vsel %vm108_vm4, %v162_v15, %v105_v21 }
 0x18c   :  { %v114_v25 = vsel %vm111_vm5, %v113_v22, %v109_v24 }
 0x18d   :  { %v115_v26 = vmul.f32 %v114_v25, %v95_v23 }
 0x18f   :  { %v116_v27 = vmul.f32 %v159_v4, %v115_v26 }
 0x191   :  { %v117_v28 = vsel %vm87_vm1, %v116_v27, 0.0 }
 0x192   :  { %118 = vadd.xlane.f32.xlu1 %v117_v28 }
 0x205   :  { %v119_v33 = vpop.xlane.xlu1 %118 }
 0x206   :  { %v125_v34 = vadd.f32 %v124_v31, %v119_v33 }
 0x208   :  { %v129_v35 = vperm.slane %v125_v34, %v128_v32 }
 0x20a   :  { %132 = vst.msk [vmem:[#allocation8] sm:$0x1] %vm131_vm6, %v129_v35 }
 0x20b   :  { %143 = dma.vmem_to_hbm [thread:$0]  %s139_s3, 16, %s141_s8, [#allocation5]  }
 0x20c   :  { %239 = dma.done.wait [#allocation5], 16  }
 0x20d   :  { %240 = vsyncadd [#allocation5], 4294967280 }
 0x20e   :  { %148 = vsyncpa [#allocation4], 1 }
 0x20f   :  { %149 = vsyncpa [#allocation7], 1 }
 0x210   :  { %150 = vsyncpa [#allocation5], 1 }

</bundles_post_ra>
